<compile_context>
chip_gen: v6e
topology: v6e:2x2x1
jax: 0.10.0
libtpu: 0.0.40
codegen_flags: <defaults>
</compile_context>

<pallas_src>
import functools

import jax
import jax.numpy as jnp
from jax import lax
from jax.experimental import pallas as pl
from jax.experimental.pallas import tpu as pltpu


def _attn_head_kernel(x_ref, wq_ref, bq_ref, wk_ref, bk_ref, wv_ref, bv_ref,
                      *out_refs, scale: float):
    """One (batch, head) grid step: per-head QKV proj + softmax(QK^T * scale) V."""
    ctx_ref = out_refs[0]
    attnw_ref = out_refs[1] if len(out_refs) > 1 else None

    x = x_ref[0]                                    # (S, D)

    # nn.Linear semantics: y = x @ W^T + b.  Per-head weight block is (hd, D),
    # so contract x's dim 1 with the weight's dim 1 -- no transpose needed.
    dn = (((1,), (1,)), ((), ()))
    q = lax.dot_general(x, wq_ref[0], dn,
                        preferred_element_type=jnp.float32) + bq_ref[0]  # (S, hd)
    k = lax.dot_general(x, wk_ref[0], dn,
                        preferred_element_type=jnp.float32) + bk_ref[0]  # (S, hd)
    v = lax.dot_general(x, wv_ref[0], dn,
                        preferred_element_type=jnp.float32) + bv_ref[0]  # (S, hd)

    # Scores (S, S) in float32 (matches torch softmax(dtype=float32)).
    # TODO(synk): for real SigLIP (head_dim=64/72) group 2-4 heads per grid
    # step so the contraction/output widths better fill the 128/256-wide MXU.
    s = lax.dot_general(q, k, dn, preferred_element_type=jnp.float32) * scale
    m = jnp.max(s, axis=-1, keepdims=True)
    e = jnp.exp(s - m)
    denom = jnp.sum(e, axis=-1, keepdims=True)
    p = e * pl.reciprocal(denom, approx=True)       # EUP reciprocal, not VALU divide

    if attnw_ref is not None:
        attnw_ref[0, 0] = p.astype(attnw_ref.dtype)

    # dropout with p = attention_dropout = 0.0 (eval) is the identity -> skipped.
    ctx = jnp.dot(p.astype(v.dtype), v, preferred_element_type=jnp.float32)  # (S, hd)
    ctx_ref[0, 0] = ctx.astype(ctx_ref.dtype)


def _out_proj_kernel(ctx_ref, wo_ref, bo_ref, out_ref, acc_ref):
    """Accumulate per-head context through the output projection over grid axis 1."""
    h = pl.program_id(1)

    @pl.when(h == 0)
    def _():
        acc_ref[...] = jnp.broadcast_to(
            bo_ref[...].astype(jnp.float32), acc_ref.shape)

    ctx = ctx_ref[0, 0]                             # (S, hd)
    # wo_ref[0] is Wo[:, h*hd:(h+1)*hd]  -> (D, hd); contract over hd.
    acc_ref[...] += lax.dot_general(ctx, wo_ref[0], (((1,), (1,)), ((), ())),
                                    preferred_element_type=jnp.float32)

    @pl.when(h == pl.num_programs(1) - 1)
    def _():
        out_ref[0] = acc_ref[...].astype(out_ref.dtype)


def siglip_attention(hidden_states, params, *, num_heads: int,
                     return_attn_weights: bool = True):
    """hidden_states: (B, S, D). params: PyTorch-style q/k/v/out weights + biases."""
    B, S, D = hidden_states.shape
    H = num_heads
    head_dim = D // H
    scale = head_dim ** (-0.5)
    dtype = hidden_states.dtype

    # Host-side re-layout so every grid step gets a contiguous per-head block.
    wq = params["q_w"].reshape(H, head_dim, D)          # rows h*hd:(h+1)*hd of Wq
    wk = params["k_w"].reshape(H, head_dim, D)
    wv = params["v_w"].reshape(H, head_dim, D)
    bq = params["q_b"].reshape(H, 1, head_dim)
    bk = params["k_b"].reshape(H, 1, head_dim)
    bv = params["v_b"].reshape(H, 1, head_dim)
    # out_proj: per-head column block Wo[:, h*hd:(h+1)*hd] -> (H, D, hd)
    wo = params["o_w"].reshape(D, H, head_dim).transpose(1, 0, 2)
    bo = params["o_b"].reshape(1, D)

    vmem_limit = 32 * 1024 * 1024   # explicit scoped-VMEM limit (safe on v5e/v6e/v7x)

    # ---- Kernel 1: per-(batch, head) attention --------------------------------
    out_shapes = (jax.ShapeDtypeStruct((B, H, S, head_dim), dtype),)
    out_specs = (pl.BlockSpec((1, 1, S, head_dim), lambda b, h: (b, h, 0, 0)),)
    if return_attn_weights:
        out_shapes = out_shapes + (jax.ShapeDtypeStruct((B, H, S, S), dtype),)
        out_specs = out_specs + (
            pl.BlockSpec((1, 1, S, S), lambda b, h: (b, h, 0, 0)),)

    attn_results = pl.pallas_call(
        functools.partial(_attn_head_kernel, scale=scale),
        out_shape=out_shapes,
        grid_spec=pltpu.PrefetchScalarGridSpec(
            num_scalar_prefetch=0,
            grid=(B, H),
            in_specs=[
                pl.BlockSpec((1, S, D), lambda b, h: (b, 0, 0)),          # x
                pl.BlockSpec((1, head_dim, D), lambda b, h: (h, 0, 0)),   # Wq[h]
                pl.BlockSpec((1, 1, head_dim), lambda b, h: (h, 0, 0)),   # bq[h]
                pl.BlockSpec((1, head_dim, D), lambda b, h: (h, 0, 0)),   # Wk[h]
                pl.BlockSpec((1, 1, head_dim), lambda b, h: (h, 0, 0)),   # bk[h]
                pl.BlockSpec((1, head_dim, D), lambda b, h: (h, 0, 0)),   # Wv[h]
                pl.BlockSpec((1, 1, head_dim), lambda b, h: (h, 0, 0)),   # bv[h]
            ],
            out_specs=out_specs,
        ),
        compiler_params=pltpu.CompilerParams(
            dimension_semantics=("parallel", "parallel"),
            vmem_limit_bytes=vmem_limit),
    )(hidden_states, wq, bq, wk, bk, wv, bv)

    if return_attn_weights:
        ctx, attn_weights = attn_results
    else:
        (ctx,) = attn_results
        attn_weights = None

    # ---- Kernel 2: output projection (reduction over the head axis) -----------
    attn_output = pl.pallas_call(
        _out_proj_kernel,
        out_shape=jax.ShapeDtypeStruct((B, S, D), dtype),
        grid_spec=pltpu.PrefetchScalarGridSpec(
            num_scalar_prefetch=0,
            grid=(B, H),
            in_specs=[
                pl.BlockSpec((1, 1, S, head_dim), lambda b, h: (b, h, 0, 0)),  # ctx
                pl.BlockSpec((1, D, head_dim), lambda b, h: (h, 0, 0)),        # Wo[:, h]
                pl.BlockSpec((1, D), lambda b, h: (0, 0)),                     # bo
            ],
            out_specs=pl.BlockSpec((1, S, D), lambda b, h: (b, 0, 0)),
            scratch_shapes=[pltpu.VMEM((S, D), jnp.float32)],
        ),
        compiler_params=pltpu.CompilerParams(
            dimension_semantics=("parallel", "arbitrary"),
            vmem_limit_bytes=vmem_limit),
    )(ctx, wo, bo)

    return attn_output, attn_weights


def _reference(hidden_states, params, num_heads):
    """Pure-JAX reference mirroring the PyTorch forward."""
    B, S, D = hidden_states.shape
    hd = D // num_heads
    scale = hd ** (-0.5)

    def lin(x, w, b):
        return x @ w.T + b

    q = lin(hidden_states, params["q_w"], params["q_b"])
    k = lin(hidden_states, params["k_w"], params["k_b"])
    v = lin(hidden_states, params["v_w"], params["v_b"])

    def split(t):  # (B,S,D) -> (B,H,S,hd)
        return t.reshape(B, S, num_heads, hd).transpose(0, 2, 1, 3)

    q, k, v = split(q), split(k), split(v)
    w = jnp.einsum("bhqd,bhkd->bhqk", q, k) * scale
    w = jax.nn.softmax(w.astype(jnp.float32), axis=-1).astype(q.dtype)
    o = jnp.einsum("bhqk,bhkd->bhqd", w, v)
    o = o.transpose(0, 2, 1, 3).reshape(B, S, D)
    o = lin(o, params["o_w"], params["o_b"])
    return o, w


if __name__ == "__main__":
    # Small, shape-consistent config: embed_dim=32, heads=4 (head_dim=8), seq=16.
    B, S, D, H = 2, 16, 32, 4
    key = jax.random.PRNGKey(0)
    ks = jax.random.split(key, 9)

    scale_init = 0.02
    params = {
        "q_w": jax.random.normal(ks[0], (D, D), jnp.float32) * scale_init,
        "q_b": jax.random.normal(ks[1], (D,), jnp.float32) * scale_init,
        "k_w": jax.random.normal(ks[2], (D, D), jnp.float32) * scale_init,
        "k_b": jax.random.normal(ks[3], (D,), jnp.float32) * scale_init,
        "v_w": jax.random.normal(ks[4], (D, D), jnp.float32) * scale_init,
        "v_b": jax.random.normal(ks[5], (D,), jnp.float32) * scale_init,
        "o_w": jax.random.normal(ks[6], (D, D), jnp.float32) * scale_init,
        "o_b": jax.random.normal(ks[7], (D,), jnp.float32) * scale_init,
    }
    x = jax.random.normal(ks[8], (B, S, D), jnp.float32)

    out, attn_w = siglip_attention(x, params, num_heads=H)
    out = jax.block_until_ready(out)
    attn_w = jax.block_until_ready(attn_w)

    ref_out, ref_w = _reference(x, params, H)
    assert out.shape == (B, S, D)
    assert attn_w.shape == (B, H, S, S)
    # Tolerance loosened vs 1e-5 because pl.reciprocal(approx=True) is used in
    # the softmax normalization.
    assert jnp.allclose(out, ref_out, atol=2e-3, rtol=2e-3), (
        float(jnp.max(jnp.abs(out - ref_out))))
    assert jnp.allclose(attn_w, ref_w, atol=2e-3, rtol=2e-3), (
        float(jnp.max(jnp.abs(attn_w - ref_w))))

    # Also exercise the weights-free fast path (no B*H*S^2 HBM writeback).
    out_nw, none_w = siglip_attention(x, params, num_heads=H,
                                      return_attn_weights=False)
    out_nw = jax.block_until_ready(out_nw)
    assert none_w is None
    assert jnp.allclose(out_nw, ref_out, atol=2e-3, rtol=2e-3)

    print("KERNEL_OK")
</pallas_src>

<mosaic_0001>
module attributes {stable_mosaic.version = 11 : i64} {
  func.func @_attn_head_kernel(%arg0: i32, %arg1: i32, %arg2: memref<1x16x32xf32, #tpu.memory_space<vmem>>, %arg3: memref<1x8x32xf32, #tpu.memory_space<vmem>>, %arg4: memref<1x1x8xf32, #tpu.memory_space<vmem>>, %arg5: memref<1x8x32xf32, #tpu.memory_space<vmem>>, %arg6: memref<1x1x8xf32, #tpu.memory_space<vmem>>, %arg7: memref<1x8x32xf32, #tpu.memory_space<vmem>>, %arg8: memref<1x1x8xf32, #tpu.memory_space<vmem>>, %arg9: memref<1x1x16x8xf32, #tpu.memory_space<vmem>>, %arg10: memref<1x1x16x16xf32, #tpu.memory_space<vmem>>) attributes {dimension_semantics = [#tpu.dimension_semantics<parallel>, #tpu.dimension_semantics<parallel>], iteration_bounds = array<i64: 2, 4>, scalar_prefetch = 0 : i64, scratch_operands = 0 : i64, tpu.core_type = #tpu.core_type<tc>, window_params = [{transform_indices = @transform_0, window_bounds = array<i64: 1, 16, 32>}, {transform_indices = @transform_1, window_bounds = array<i64: 1, 8, 32>}, {transform_indices = @transform_2, window_bounds = array<i64: 1, 1, 8>}, {transform_indices = @transform_3, window_bounds = array<i64: 1, 8, 32>}, {transform_indices = @transform_4, window_bounds = array<i64: 1, 1, 8>}, {transform_indices = @transform_5, window_bounds = array<i64: 1, 8, 32>}, {transform_indices = @transform_6, window_bounds = array<i64: 1, 1, 8>}, {transform_indices = @transform_7, window_bounds = array<i64: 1, 1, 16, 8>}, {transform_indices = @transform_8, window_bounds = array<i64: 1, 1, 16, 16>}]} {
    %c0 = arith.constant 0 : index
    %c0_0 = arith.constant 0 : index
    %c0_1 = arith.constant 0 : index
    %0 = vector.load %arg2[%c0, %c0_0, %c0_1] : memref<1x16x32xf32, #tpu.memory_space<vmem>>, vector<1x16x32xf32>
    %1 = vector.shape_cast %0 : vector<1x16x32xf32> to vector<16x32xf32>
    %c0_2 = arith.constant 0 : index
    %c0_3 = arith.constant 0 : index
    %c0_4 = arith.constant 0 : index
    %2 = vector.load %arg3[%c0_2, %c0_3, %c0_4] : memref<1x8x32xf32, #tpu.memory_space<vmem>>, vector<1x8x32xf32>
    %3 = vector.shape_cast %2 : vector<1x8x32xf32> to vector<8x32xf32>
    %cst = arith.constant dense<0.000000e+00> : vector<16x8xf32>
    %4 = tpu.matmul %1, %3, %cst {dimension_numbers = #tpu.dot_dimension_numbers<[1], [1], [0], [0], [0, 0, 1, 0], [], []>} : vector<16x32xf32>, vector<8x32xf32>, vector<16x8xf32> -> vector<16x8xf32>
    %c0_5 = arith.constant 0 : index
    %c0_6 = arith.constant 0 : index
    %c0_7 = arith.constant 0 : index
    %5 = vector.load %arg4[%c0_5, %c0_6, %c0_7] : memref<1x1x8xf32, #tpu.memory_space<vmem>>, vector<1x1x8xf32>
    %6 = vector.shape_cast %5 : vector<1x1x8xf32> to vector<1x8xf32>
    %7 = vector.broadcast %6 : vector<1x8xf32> to vector<16x8xf32>
    %8 = arith.addf %4, %7 : vector<16x8xf32>
    %c0_8 = arith.constant 0 : index
    %c0_9 = arith.constant 0 : index
    %c0_10 = arith.constant 0 : index
    %9 = vector.load %arg5[%c0_8, %c0_9, %c0_10] : memref<1x8x32xf32, #tpu.memory_space<vmem>>, vector<1x8x32xf32>
    %10 = vector.shape_cast %9 : vector<1x8x32xf32> to vector<8x32xf32>
    %cst_11 = arith.constant dense<0.000000e+00> : vector<16x8xf32>
    %11 = tpu.matmul %1, %10, %cst_11 {dimension_numbers = #tpu.dot_dimension_numbers<[1], [1], [0], [0], [0, 0, 1, 0], [], []>} : vector<16x32xf32>, vector<8x32xf32>, vector<16x8xf32> -> vector<16x8xf32>
    %c0_12 = arith.constant 0 : index
    %c0_13 = arith.constant 0 : index
    %c0_14 = arith.constant 0 : index
    %12 = vector.load %arg6[%c0_12, %c0_13, %c0_14] : memref<1x1x8xf32, #tpu.memory_space<vmem>>, vector<1x1x8xf32>
    %13 = vector.shape_cast %12 : vector<1x1x8xf32> to vector<1x8xf32>
    %14 = vector.broadcast %13 : vector<1x8xf32> to vector<16x8xf32>
    %15 = arith.addf %11, %14 : vector<16x8xf32>
    %c0_15 = arith.constant 0 : index
    %c0_16 = arith.constant 0 : index
    %c0_17 = arith.constant 0 : index
    %16 = vector.load %arg7[%c0_15, %c0_16, %c0_17] : memref<1x8x32xf32, #tpu.memory_space<vmem>>, vector<1x8x32xf32>
    %17 = vector.shape_cast %16 : vector<1x8x32xf32> to vector<8x32xf32>
    %cst_18 = arith.constant dense<0.000000e+00> : vector<16x8xf32>
    %18 = tpu.matmul %1, %17, %cst_18 {dimension_numbers = #tpu.dot_dimension_numbers<[1], [1], [0], [0], [0, 0, 1, 0], [], []>} : vector<16x32xf32>, vector<8x32xf32>, vector<16x8xf32> -> vector<16x8xf32>
    %c0_19 = arith.constant 0 : index
    %c0_20 = arith.constant 0 : index
    %c0_21 = arith.constant 0 : index
    %19 = vector.load %arg8[%c0_19, %c0_20, %c0_21] : memref<1x1x8xf32, #tpu.memory_space<vmem>>, vector<1x1x8xf32>
    %20 = vector.shape_cast %19 : vector<1x1x8xf32> to vector<1x8xf32>
    %21 = vector.broadcast %20 : vector<1x8xf32> to vector<16x8xf32>
    %22 = arith.addf %18, %21 : vector<16x8xf32>
    %cst_22 = arith.constant dense<0.000000e+00> : vector<16x16xf32>
    %23 = tpu.matmul %8, %15, %cst_22 {dimension_numbers = #tpu.dot_dimension_numbers<[1], [1], [0], [0], [0, 0, 1, 0], [], []>} : vector<16x8xf32>, vector<16x8xf32>, vector<16x16xf32> -> vector<16x16xf32>
    %cst_23 = arith.constant 0.353553385 : f32
    %24 = vector.broadcast %cst_23 : f32 to vector<16x16xf32>
    %25 = arith.mulf %23, %24 : vector<16x16xf32>
    %cst_24 = arith.constant dense<0xFF800000> : vector<16xf32>
    %26 = vector.multi_reduction <maximumf>, %25, %cst_24 [1] : vector<16x16xf32> to vector<16xf32>
    %27 = vector.shape_cast %26 : vector<16xf32> to vector<16x1xf32>
    %28 = vector.broadcast %27 : vector<16x1xf32> to vector<16x16xf32>
    %29 = arith.subf %25, %28 : vector<16x16xf32>
    %30 = math.exp %29 : vector<16x16xf32>
    %cst_25 = arith.constant dense<0.000000e+00> : vector<16xf32>
    %31 = vector.multi_reduction <add>, %30, %cst_25 [1] : vector<16x16xf32> to vector<16xf32>
    %32 = vector.shape_cast %31 : vector<16xf32> to vector<16x1xf32>
    %33 = tpu.reciprocal %32 {approx = true} : vector<16x1xf32> -> vector<16x1xf32>
    %34 = vector.broadcast %33 : vector<16x1xf32> to vector<16x16xf32>
    %35 = arith.mulf %30, %34 : vector<16x16xf32>
    %c0_26 = arith.constant 0 : index
    %c0_27 = arith.constant 0 : index
    %c0_28 = arith.constant 0 : index
    %c0_29 = arith.constant 0 : index
    %36 = vector.load %arg10[%c0_26, %c0_27, %c0_28, %c0_29] : memref<1x1x16x16xf32, #tpu.memory_space<vmem>>, vector<1x1x16x16xf32>
    %37 = vector.shape_cast %36 : vector<1x1x16x16xf32> to vector<16x16xf32>
    %38 = vector.shape_cast %35 : vector<16x16xf32> to vector<1x1x16x16xf32>
    tpu.vector_store %arg10[%c0_26, %c0_27, %c0_28, %c0_29], %38 {strides = array<i32>} : memref<1x1x16x16xf32, #tpu.memory_space<vmem>>, vector<1x1x16x16xf32>,
    %cst_30 = arith.constant dense<0.000000e+00> : vector<16x8xf32>
    %39 = tpu.matmul %35, %22, %cst_30 {dimension_numbers = #tpu.dot_dimension_numbers<[1], [0], [0], [1], [0, 0, 1, 1], [], []>} : vector<16x16xf32>, vector<16x8xf32>, vector<16x8xf32> -> vector<16x8xf32>
    %c0_31 = arith.constant 0 : index
    %c0_32 = arith.constant 0 : index
    %c0_33 = arith.constant 0 : index
    %c0_34 = arith.constant 0 : index
    %40 = vector.load %arg9[%c0_31, %c0_32, %c0_33, %c0_34] : memref<1x1x16x8xf32, #tpu.memory_space<vmem>>, vector<1x1x16x8xf32>
    %41 = vector.shape_cast %40 : vector<1x1x16x8xf32> to vector<16x8xf32>
    %42 = vector.shape_cast %39 : vector<16x8xf32> to vector<1x1x16x8xf32>
    tpu.vector_store %arg9[%c0_31, %c0_32, %c0_33, %c0_34], %42 {strides = array<i32>} : memref<1x1x16x8xf32, #tpu.memory_space<vmem>>, vector<1x1x16x8xf32>,
    return
  }
  func.func @transform_0(%arg0: i32, %arg1: i32) -> (i32, i32, i32) {
    %c0_i32 = arith.constant 0 : i32
    %c0_i32_0 = arith.constant 0 : i32
    %c0_i32_1 = arith.constant 0 : i32
    return %arg0, %c0_i32, %c0_i32_0 : i32, i32, i32
  }
  func.func @transform_1(%arg0: i32, %arg1: i32) -> (i32, i32, i32) {
    %c0_i32 = arith.constant 0 : i32
    %c0_i32_0 = arith.constant 0 : i32
    %c0_i32_1 = arith.constant 0 : i32
    return %arg1, %c0_i32, %c0_i32_0 : i32, i32, i32
  }
  func.func @transform_2(%arg0: i32, %arg1: i32) -> (i32, i32, i32) {
    %c0_i32 = arith.constant 0 : i32
    %c0_i32_0 = arith.constant 0 : i32
    %c0_i32_1 = arith.constant 0 : i32
    return %arg1, %c0_i32, %c0_i32_0 : i32, i32, i32
  }
  func.func @transform_3(%arg0: i32, %arg1: i32) -> (i32, i32, i32) {
    %c0_i32 = arith.constant 0 : i32
    %c0_i32_0 = arith.constant 0 : i32
    %c0_i32_1 = arith.constant 0 : i32
    return %arg1, %c0_i32, %c0_i32_0 : i32, i32, i32
  }
  func.func @transform_4(%arg0: i32, %arg1: i32) -> (i32, i32, i32) {
    %c0_i32 = arith.constant 0 : i32
    %c0_i32_0 = arith.constant 0 : i32
    %c0_i32_1 = arith.constant 0 : i32
    return %arg1, %c0_i32, %c0_i32_0 : i32, i32, i32
  }
  func.func @transform_5(%arg0: i32, %arg1: i32) -> (i32, i32, i32) {
    %c0_i32 = arith.constant 0 : i32
    %c0_i32_0 = arith.constant 0 : i32
    %c0_i32_1 = arith.constant 0 : i32
    return %arg1, %c0_i32, %c0_i32_0 : i32, i32, i32
  }
  func.func @transform_6(%arg0: i32, %arg1: i32) -> (i32, i32, i32) {
    %c0_i32 = arith.constant 0 : i32
    %c0_i32_0 = arith.constant 0 : i32
    %c0_i32_1 = arith.constant 0 : i32
    return %arg1, %c0_i32, %c0_i32_0 : i32, i32, i32
  }
  func.func @transform_7(%arg0: i32, %arg1: i32) -> (i32, i32, i32, i32) {
    %c0_i32 = arith.constant 0 : i32
    %c0_i32_0 = arith.constant 0 : i32
    %c0_i32_1 = arith.constant 0 : i32
    return %arg0, %arg1, %c0_i32, %c0_i32_0 : i32, i32, i32, i32
  }
  func.func @transform_8(%arg0: i32, %arg1: i32) -> (i32, i32, i32, i32) {
    %c0_i32 = arith.constant 0 : i32
    %c0_i32_0 = arith.constant 0 : i32
    %c0_i32_1 = arith.constant 0 : i32
    return %arg0, %arg1, %c0_i32, %c0_i32_0 : i32, i32, i32, i32
  }
}

</mosaic_0001>

<bundles_post_ra>
// kernel: tpu_custom_call.1
= control target key start
LH: loop header
LB: loop body
LE: loop exit
PB: predicated region body
PF: predicated region fallthrough
CT: control target
= control target key end

     0   :  { %s2253_s0 = inlined_call_operand.hbm [shape: f32[2,16,32], index: 0, kind: input, shape index: {}]   ;;  %s2254_s1 = inlined_call_operand.hbm [shape: f32[4,8,32], index: 1, kind: input, shape index: {}]   ;;  %s2255_s2 = inlined_call_operand.hbm [shape: f32[4,1,8], index: 2, kind: input, shape index: {}]   ;;  %s2256_s3 = inlined_call_operand.hbm [shape: f32[4,8,32], index: 3, kind: input, shape index: {}]   ;;  %s2257_s4 = inlined_call_operand.vmem [shape: f32[4,1,8], index: 4, kind: input, shape index: {}]   ;;  %s2258_s5 = inlined_call_operand.hbm [shape: f32[4,8,32], index: 5, kind: input, shape index: {}]   ;;  %s2259_s6 = inlined_call_operand.vmem [shape: f32[4,1,8], index: 6, kind: input, shape index: {}]   ;;  %s2260_s7 = inlined_call_operand.vmem [shape: f32[2,4,16,8], index: 7, kind: output, shape index: {0}]   ;;  %s2261_s8 = inlined_call_operand.hbm [shape: f32[2,4,16,16], index: 8, kind: output, shape index: {1}]  }
   0x1   :  { %2283 = sst [smem:[#allocation31_spill]] %s2253_s0 }
   0x2   :  { %2284 = sst [smem:[#allocation32_spill]] %s2254_s1 }
   0x3   :  { %2285 = sst [smem:[#allocation33_spill]] %s2256_s3 }
   0x4   :  { %2286 = sst [smem:[#allocation34_spill]] %s2257_s4 }
   0x5   :  { %2287 = sst [smem:[#allocation35_spill]] %s2258_s5 }
   0x6   :  { %2288 = sst [smem:[#allocation36_spill]] %s2259_s6 }
   0x7   :  { %2289 = sst [smem:[#allocation37_spill]] %s2260_s7 }
   0x8   :  { %2290 = sst [smem:[#allocation38_spill]] %s2261_s8 }
   0x9   :  { %14 = vsyncpa [#allocation3], 0 }
   0xa   :  { %16 = vsyncpa [#allocation3 + $0x1], 0 }
   0xb   :  { %17 = vsyncpa [#allocation6], 0 }
   0xc   :  { %19 = vsyncpa [#allocation6 + $0x1], 0 }
   0xd   :  { %20 = vsyncpa [#allocation9], 0 }
   0xe   :  { %22 = vsyncpa [#allocation9 + $0x1], 0 }
   0xf   :  { %23 = vsyncpa [#allocation4], 0 }
  0x10   :  { %25 = vsyncpa [#allocation4 + $0x1], 0  ;;  %s1851_s27 = smov 0   ;;  %s1853_s28 = smov 0  }
  0x11   :  { %s1855_s29 = smov 0   ;;  %s1857_s30 = smov 0  }
  0x12   :  { %s1859_s9 = smov 0   ;;  %s1861_s10 = smov 0  }
  0x13   :  { %s1863_s11 = smov 0   ;;  %s1865_s12 = smov 0  }
  0x14   :  { %s1867_s13 = smov 0   ;;  %s1869_s14 = smov 0  }
  0x15   :  { %s1871_s15 = smov 0   ;;  %s1873_s16 = smov 0  }
  0x16   :  { %s1875_s17 = smov 0   ;;  %s1877_s18 = smov 0  }
  0x17 LB: > { %2291 = sst [smem:[#allocation16_spill]] %s1742_s27  ;;  %s1920_s19 = sadd.s32 4294967295, %s1794_s18   ;;  %s1794_s18 = sphi %s1877_s18, %s31_s18   ;;  %s1790_s17 = sphi %s1875_s17, %s2349_s17   ;;  %s1786_s16 = sphi %s1873_s16, %s2348_s16   ;;  %s1782_s15 = sphi %s1871_s15, %s2347_s15   ;;  %s1778_s14 = sphi %s1869_s14, %s2346_s14   ;;  %s1774_s13 = sphi %s1867_s13, %s2357_s13   ;;  %s1770_s12 = sphi %s1865_s12, %s2356_s12   ;;  %s1766_s11 = sphi %s1863_s11, %s2355_s11   ;;  %s1762_s10 = sphi %s1861_s10, %s2354_s10   ;;  %s1758_s9 = sphi %s1859_s9, %s2353_s9   ;;  %s1754_s30 = sphi %s1857_s30, %s2342_s30   ;;  %s1750_s29 = sphi %s1855_s29, %s2352_s29   ;;  %s1746_s28 = sphi %s1853_s28, %s2351_s28   ;;  %s1742_s27 = sphi %s1851_s27, %s2341_s27  }
  0x18   : > { %2292 = sst [smem:[#allocation17_spill]] %s1746_s28  ;;  %s40_s20 = sadd.s32 1, %s1786_s16 }
  0x19   : > { %2293 = sst [smem:[#allocation18_spill]] %s1758_s9  ;;  %p1923_p0 = scmp.ge.s32.totalorder %s40_s20, 4 }
  0x1a   : > { %2294 = sst [smem:[#allocation19_spill]] %s1774_s13  ;;  %p58_p1 = scmp.eq.s32.totalorder %s1794_s18, 0 }
  0x1b   : > { %2295 = sst [smem:[#allocation20_spill]] %s1778_s14  ;;  %p2268_p2 = scmp.eq.s32.totalorder %s1920_s19, 0 }
  0x1c   : > { %2296 = sst [smem:[#allocation21_spill]] %s1782_s15  ;;  %s76_s22 = sadd.s32 1, %s1762_s10 }
  0x1d   : > { %2297 = sst [smem:[#allocation22_spill]] %s1786_s16  ;;  %s2359_s20 = smov (%p1923_p0, %s40_s20), 0 }
  0x1e   : > { %2298 = sst [smem:[#allocation23_spill]] %s1790_s17  ;;  %p83_p3 = scmp.ne.s32.totalorder %s1762_s10, %s1758_s9 }
  0x1f   : > { %2299 = sst [smem:[#allocation24_spill]] %s1920_s19  ;;  %p89_p4 = scmp.ne.s32.totalorder %s1758_s9, %s1754_s30 }
  0x20   : > { %2301 = sst [smem:[#allocation25_spill]] %s2359_s20  ;;  %s1939_s23 = ssub.s32 %s1786_s16, %s2359_s20 }
  0x21   : > { %p74_p6 = scmp.eq.s32.totalorder %s1939_s23, 0  ;;  %p85_p7 = por %p83_p3, %p58_p1 }
  0x22   : > { %p1947_p8 = por %p89_p4, %p2268_p2  ;;  %p2267_p9 = scmp.lt.s32.totalorder %s1794_s18, 8 }
  0x23   : > { %s1952_s25 = scalar_select %p74_p6, %s1762_s10, %s76_s22  }
  0x24   : > { %s2302_s24 = scalar_select %p1947_p8, 1, 0 }
  0x25   : > { %2304 = sst [smem:[#allocation27_spill]] %s1952_s25  ;;  %s2269_s26 = sand.u32 1, %s1794_s18  }
  0x26   : > { %2303 = sst [smem:[#allocation26_spill]] %s2302_s24  ;;  %s2266_s30 = sand.u32 1, %s1762_s10  }
  0x27   : > { %s1959_s20 = sshll.u32 %s2266_s30, 3  ;;  %s1962_s7 = sshll.u32 %s1786_s16, 7 }
  0x28   : > { %s2305_s1 = sld [smem:[#allocation32_spill]]  ;;  %s324_s4 = scalar_lea.vmem [#allocation5], %s1959_s20 }
  0x29   : > { %s331_s14 = sshll.u32 %s324_s4, 4  ;;  %p1971_p10 = pnand %p2267_p9, %p85_p7  ;;  %s332_s14 = int_to_ptr.vmem [resolvable:$true] %s331_s14 }
  0x2a   : > { %p1264_p11 = scmp.ge.s32.totalorder %s1794_s18, 1  ;;  %p401_p12 = scmp.lt.s32.totalorder %s1794_s18, 9 }
  0x2b   : > { %s1979_s30 = scalar_lea.sflag [#allocation6], %s2269_s26  ;;  %p2274_p13 = pneg %p1971_p10 }
  0x2c   : > { %s1515_s25 = scalar_lea.vmem %s332_s14, 128  ;;  %s1796_s4 = smov [#allocation5]  }
  0x2d   : > { %p1516_p3 = scmp.ne.s32.totalorder %s332_s14, %s1515_s25  ;;  %s1520_s8 = sshll.u32 %s1796_s4, 4  ;;  %s1521_s8 = int_to_ptr.vmem [resolvable:$false] %s1520_s8 }
  0x2e   : > { %s329_s6 = scalar_lea.hbm %s2305_s1, %s1962_s7  ;;  %s1522_s15 = scalar_lea.vmem %s1521_s8, 256 }
  0x2f   : > { %p1518_p4 = pnand %p1516_p3, %p2274_p13  ;;  %p1523_p7 = scmp.lt.s32.totalorder %s332_s14, %s1521_s8 }
  0x30   : > { %p1524_p9 = scmp.lt.s32.totalorder %s1522_s15, %s1515_s25 }
  0x31   : > { %p1519_p6 = pneg %p1518_p4 }
  0x32   : > { %p1525_p5 = por %p1524_p9, %p1523_p7 }
  0x34   : > { %p1526_p2 = pnand %p1525_p5, %p1519_p6 }
  0x36   : > { %1529 = shalt.err (!%p1526_p2)
}
  0x37   : > { %1362 = dma.hbm_to_vmem [thread:$0]  (!%p1971_p10), %s329_s6, 128, %s332_s14, %s1979_s30  }
  0x38   : > { %p1993_p3 = pnand %p1264_p11, %p401_p12  ;;  %s2309_s3 = sld [smem:[#allocation33_spill]] }
  0x39   : > { %s359_s26 = scalar_lea.vmem [#allocation8], %s1959_s20  ;;  %s2310_s24 = sand.u32 1, %s1794_s18  }
  0x3a   : > { %s2307_s4 = scalar_select %p1993_p3, 1, 0 }
  0x3b   : > { %s366_s1 = sshll.u32 %s359_s26, 4  ;;  %s2004_s9 = scalar_lea.sflag [#allocation9], %s2310_s24  ;;  %s367_s1 = int_to_ptr.vmem [resolvable:$true] %s366_s1 }
  0x3c   : > { %2308 = sst [smem:[#allocation28_spill]] %s2307_s4  ;;  %s1543_s5 = scalar_lea.vmem %s367_s1, 128 }
  0x3d   : > { %p1544_p2 = scmp.ne.s32.totalorder %s367_s1, %s1543_s5  ;;  %s1797_s6 = smov [#allocation8]  }
  0x3e   : > { %s364_s15 = scalar_lea.hbm %s2309_s3, %s1962_s7  ;;  %s1548_s14 = sshll.u32 %s1797_s6, 4  ;;  %s1549_s14 = int_to_ptr.vmem [resolvable:$false] %s1548_s14 }
  0x3f   : > { %p1546_p5 = pnand %p1544_p2, %p2274_p13  ;;  %s1550_s4 = scalar_lea.vmem %s1549_s14, 256 }
  0x40   : > { %p1551_p11 = scmp.lt.s32.totalorder %s367_s1, %s1549_s14  ;;  %p1552_p12 = scmp.lt.s32.totalorder %s1550_s4, %s1543_s5 }
  0x41   : > { %p1547_p9 = pneg %p1546_p5 }
  0x42   : > { %p1553_p4 = por %p1552_p12, %p1551_p11 }
  0x44   : > { %p1554_p6 = pnand %p1553_p4, %p1547_p9 }
  0x46   : > { %1557 = shalt.err (!%p1554_p6)
}
  0x47   : > { %1368 = dma.hbm_to_vmem [thread:$0]  (!%p1971_p10), %s364_s15, 128, %s367_s1, %s2004_s9  }
  0x48   : > { %s1251_s5 = sadd.s32 4294967294, %s1794_s18   ;;  %s43_s24 = sadd.s32 1, %s1790_s17 }
  0x49   : > { %s2361_s24 = smov (!%p1923_p0, %s43_s24), %s1790_s17  ;;  %s50_s26 = sadd.s32 1, %s1774_s13 }
  0x4a   : > { %p57_p7 = scmp.ne.s32.totalorder %s1774_s13, %s1770_s12  ;;  %p45_p2 = scmp.ge.s32.totalorder %s2361_s24, 2 }
  0x4b   : > { %p63_p5 = scmp.ne.s32.totalorder %s1770_s12, %s1766_s11  ;;  %s262_s25 = sadd.s32 1, %s1750_s29 }
  0x4c   : > { %p2024_p9 = por %p58_p1, %p57_p7  ;;  %s2363_s24 = smov (%p45_p2, %s2361_s24), 0 }
  0x4d   : > { %2312 = sst [smem:[#allocation29_spill]] %s2363_s24  ;;  %p2313_p11 = scmp.eq.s32.totalorder %s1920_s19, 0 }
  0x4e   : > { %p272_p0 = scmp.ne.s32.totalorder %s1750_s29, %s1746_s28  ;;  %s47_s21 = ssub.s32 %s1790_s17, %s2363_s24 }
  0x4f   : > { %p2033_p12 = por %p2313_p11, %p63_p5  ;;  %p278_p4 = scmp.ne.s32.totalorder %s1746_s28, %s1742_s27 }
  0x50   : > { %p48_p6 = scmp.eq.s32.totalorder %s47_s21, 0  ;;  %s259_s11 = sor.u32 %s1939_s23, %s47_s21 }
  0x51   : > { %p260_p1 = scmp.eq.s32.totalorder %s259_s11, 0  ;;  %p2315_p7 = scmp.eq.s32.totalorder %s1920_s19, 7 }
  0x52   : > { %s2051_s15 = scalar_select %p48_p6, %s1774_s13, %s50_s26  }
  0x53   : > { %p2046_p13 = por %p2315_p7, %p272_p0  ;;  %p279_p2 = scmp.eq.s32.totalorder %s1251_s5, 7 }
  0x54   : > { %2317 = sst [smem:[#allocation30_spill]] %s2051_s15  ;;  %s299_s14 = sand.u32 1, %s1774_s13  }
  0x55   : > { %s2316_s8 = scalar_select %p2046_p13, 1, 0 }
  0x56   : > { %s2054_s6 = scalar_select %p260_p1, %s1750_s29, %s262_s25  }
  0x57   : > { %s1254_s3 = sshll.u32 %s299_s14, 4  ;;  %p2057_p5 = por %p279_p2, %p278_p4 }
  0x58   : > { %s1297_s27 = sshll.u32 %s1790_s17, 8  ;;  %s303_s28 = scalar_lea.vmem [#allocation2], %s1254_s3 }
  0x59   : > { %s2318_s24 = scalar_select %p2057_p5, 1, 0 }
  0x5a   : > { %s310_s23 = sshll.u32 %s303_s28, 4  ;;  %s2319_s0 = sld [smem:[#allocation31_spill]]  ;;  %s311_s23 = int_to_ptr.vmem [resolvable:$true] %s310_s23 }
  0x5b   : > { %p2320_p11 = scmp.lt.s32.totalorder %s1794_s18, 8  ;;  %s1259_s5 = sshll.u32 %s1786_s16, 4 }
  0x5c   : > { %s300_s25 = scalar_lea.sflag [#allocation3], %s299_s14  ;;  %s1571_s15 = scalar_lea.vmem %s311_s23, 256 }
  0x5d   : > { %p2069_p0 = pnand %p2320_p11, %p2024_p9  ;;  %p1572_p6 = scmp.ne.s32.totalorder %s311_s23, %s1571_s15 }
  0x5e   : > { %s1798_s3 = smov [#allocation2]  }
  0x5f   : > { %p1560_p4 = pneg %p2069_p0  ;;  %s1576_s28 = sshll.u32 %s1798_s3, 4  ;;  %s1577_s28 = int_to_ptr.vmem [resolvable:$false] %s1576_s28 }
  0x60   : > { %s309_s19 = scalar_lea.hbm %s2319_s0, %s1297_s27  ;;  %s1578_s27 = scalar_lea.vmem %s1577_s28, 512 }
  0x61   : > { %p1574_p1 = pnand %p1572_p6, %p1560_p4  ;;  %p1579_p2 = scmp.lt.s32.totalorder %s311_s23, %s1577_s28 }
  0x62   : > { %p1580_p5 = scmp.lt.s32.totalorder %s1578_s27, %s1571_s15 }
  0x63   : > { %p1575_p7 = pneg %p1574_p1 }
  0x64   : > { %p1581_p13 = por %p1580_p5, %p1579_p2 }
  0x66   : > { %p1582_p9 = pnand %p1581_p13, %p1575_p7 }
  0x68   : > { %1585 = shalt.err (!%p1582_p9)
}
  0x69   : > { %s1799_s4 = smov 128   ;;  %s1800_s14 = smov 8  }
  0x6a   : > { %1359 = dma.hbm_to_vmem [thread:$0]  (!%p2069_p0), %s309_s19, 256, %s311_s23, %s300_s25, %s1799_s4, %s1799_s4, %s1800_s14  }
  0x6b   : > { %s346_s0 = scalar_lea.hbm %s2255_s2, %s1259_s5  ;;  %s2322_s17 = sand.u32 1, %s1762_s10  }
  0x6c   : > { %s341_s3 = scalar_lea.vmem [#allocation7], %s2322_s17  ;;  %p2323_p13 = pneg %p1971_p10 }
  0x6d   : > { %s348_s16 = sshll.u32 %s341_s3, 4  ;;  %s1801_s15 = smov [#allocation7]   ;;  %s349_s16 = int_to_ptr.vmem [resolvable:$true] %s348_s16 }
  0x6e   : > { %s1599_s28 = scalar_lea.vmem %s349_s16, 16  ;;  %s1604_s27 = sshll.u32 %s1801_s15, 4  ;;  %s1605_s27 = int_to_ptr.vmem [resolvable:$false] %s1604_s27 }
  0x6f   : > { %p1600_p11 = scmp.ne.s32.totalorder %s349_s16, %s1599_s28  ;;  %s1606_s13 = scalar_lea.vmem %s1605_s27, 32 }
  0x70   : > { %p1607_p6 = scmp.lt.s32.totalorder %s349_s16, %s1605_s27  ;;  %p1608_p0 = scmp.lt.s32.totalorder %s1606_s13, %s1599_s28 }
  0x71   : > { %p1602_p5 = pnand %p1600_p11, %p2323_p13 }
  0x72   : > { %p1609_p1 = por %p1608_p0, %p1607_p6 }
  0x73   : > { %p1603_p4 = pneg %p1602_p5 }
  0x75   : > { %p1610_p7 = pnand %p1609_p1, %p1603_p4 }
  0x77   : > { %1613 = shalt.err (!%p1610_p7)
}
  0x78   : > { %1365 = dma.hbm_to_vmem [thread:$0]  (!%p1971_p10), %s346_s0, 16, %s349_s16, %s1979_s30  }
  0x79   : > { %s2324_s23 = sld [smem:[#allocation35_spill]]  ;;  %s383_s5 = scalar_lea.vmem [#allocation10], %s1959_s20 }
  0x7a   : > { %s390_s25 = sshll.u32 %s383_s5, 4  ;;  %p2325_p9 = pmov %p2323_p13  ;;  %s391_s25 = int_to_ptr.vmem [resolvable:$true] %s390_s25 }
  0x7b   : > { %s1627_s4 = scalar_lea.vmem %s391_s25, 128  ;;  %s1802_s13 = smov [#allocation10]  }
  0x7c   : > { %p1628_p2 = scmp.ne.s32.totalorder %s391_s25, %s1627_s4  ;;  %s1632_s14 = sshll.u32 %s1802_s13, 4  ;;  %s1633_s14 = int_to_ptr.vmem [resolvable:$false] %s1632_s14 }
  0x7d   : > { %s1634_s21 = scalar_lea.vmem %s1633_s14, 256  ;;  %p1635_p5 = scmp.lt.s32.totalorder %s391_s25, %s1633_s14 }
  0x7e   : > { %p1630_p11 = pnand %p1628_p2, %p2325_p9  ;;  %p1636_p4 = scmp.lt.s32.totalorder %s1634_s21, %s1627_s4 }
  0x7f   : > { %s388_s26 = scalar_lea.hbm %s2324_s23, %s1962_s7 }
  0x80   : > { %p1631_p13 = pneg %p1630_p11  ;;  %p1637_p6 = por %p1636_p4, %p1635_p5 }
  0x82   : > { %p1638_p0 = pnand %p1637_p6, %p1631_p13 }
  0x84   : > { %1641 = shalt.err (!%p1638_p0)
}
  0x85   : > { %1371 = dma.hbm_to_vmem [thread:$0]  (!%p1971_p10), %s388_s26, 128, %s391_s25, %s2004_s9  }
  0x86   : > { %405 = sbr.rel (%p1993_p3) target bundleno = 1071 (0x42f), region = 48  ;;  %s407_s7 = sand.u32 (!%p1993_p3), 1, %s1770_s12  }
  0x87   : > { %s1265_s16 = sshll.u32 (!%p1993_p3), %s407_s7, 4  ;;  %s408_s20 = scalar_lea.sflag (!%p1993_p3), [#allocation3], %s407_s7 }
  0x88   : > { %s411_s30 = scalar_lea.vmem (!%p1993_p3), [#allocation2], %s1265_s16 }
  0x8b   : > { %1725 = dma.done.wait (%p2033_p12), %s408_s20, 256  }
  0x8c   : > { %1727 = vsyncadd (%p2033_p12), %s408_s20, 4294967040  ;;  %s2327_s11 = sld [smem:[#allocation24_spill]] }
  0x8d   : > { %s2328_s3 = sld [smem:[#allocation18_spill]] }
  0x92   : > { %s416_s22 = sand.u32 1, %s2327_s11  }
  0x93   : > { %s418_s15 = sand.u32 1, %s2328_s3   ;;  %s417_s27 = scalar_lea.sflag [#allocation6], %s416_s22 }
  0x94   : > { %s2109_s9 = sshll.u32 %s418_s15, 3 }
  0x95   : > { %s420_s17 = scalar_lea.vmem [#allocation5], %s2109_s9 }
  0x96   : > { %1729 = dma.done.wait (%p1947_p8), %s417_s27, 144  }
  0x97   : > { %1731 = vsyncadd (%p1947_p8), %s417_s27, 4294967152  ;;  %s428_s19 = scalar_lea.vmem [#allocation7], %s418_s15  ;;  %s434_s1 = scalar_lea.sflag [#allocation9], %s416_s22 }
  0x98   : > { %s437_s23 = scalar_lea.vmem [#allocation8], %s2109_s9 }
  0x99   : > { %1733 = dma.done.wait (%p1947_p8), %s434_s1, 256  }
  0x9a   : > { %1735 = vsyncadd (%p1947_p8), %s434_s1, 4294967040  ;;  %s2330_s26 = sld [smem:[#allocation20_spill]]  ;;  %vm538_vm0 = vcmask 261120   ;;  %v623_v0 = vld [vmem:[%s437_s23] sm:$0xff]  ;;  %v530_v1 = vld [vmem:[%s420_s17] sm:$0xff]  ;;  %vm795_vm1 = vcmask 64512  }
  0x9b   : > { %v528_v2 = vld [vmem:[%s411_s30] sm:$0xff]  ;;  %1320 = vmatprep.subr.msk.mxu1 %vm538_vm0, %v623_v0  ;;  %1315 = vmatprep.subr.msk.mxu0 %vm538_vm0, %v530_v1  ;;  %v529_v3 = vld [vmem:[%s411_s30 + $0x8] sm:$0xff]  ;;  %s2331_s13 = sld [smem:[#allocation34_spill]]  ;;  %s446_s21 = scalar_lea.vmem [#allocation10], %s2109_s9  ;;  %vm885_vm2 = vcmask 130048  }
  0x9c   : > { %1321 = vmatpush3.xpose.msk.msra.mxu1 %vm538_vm0, %v623_v0  ;;  %1322 = vmatprep.mubr.msk.f32.mxu1 %vm538_vm0, %v528_v2  ;;  %v1273_v8 = vld [vmem:[%s428_s19] ss:$0 sm:$0xff]  ;;  %v709_v14 = vld [vmem:[%s446_s21] sm:$0xff]  ;;  %s2332_s0 = sld [smem:[#allocation17_spill]]  ;;  %p2336_p3 = scmp.ne.s32.totalorder %s2316_s8, 0 }
  0x9d   : > { %1316 = vmatpush3.xpose.msk.msra.mxu0 %vm538_vm0, %v530_v1  ;;  %1317 = vmatprep.mubr.msk.f32.mxu0 %vm538_vm0, %v528_v2  ;;  %s2333_s20 = sld [smem:[#allocation36_spill]] }
  0x9e   : > { %1325 = vmatprep.subr.msk.mxu0 %vm538_vm0, %v709_v14  ;;  %s2334_s11 = sld [smem:[#allocation21_spill]] }
  0x9f   : > { %1323 = vmatmul.mubr.msk.f32.vlgmr.msra.gmra.mxu1 %vm538_vm0, %v529_v3  ;;  %s2335_s25 = sld [smem:[#allocation38_spill]] }
  0xa0   : > { %1318 = vmatmul.mubr.msk.f32.vlgmr.msra.gmra.mxu0 %vm538_vm0, %v529_v3  ;;  %p513_p8 = scmp.lt.s32.totalorder %s2330_s26, 3  ;;  %s1292_s15 = sshll.u32 %s2330_s26, 1 }
  0xa1   : > { %1327 = vmatprep.mubr.msk.f32.mxu0 %vm538_vm0, %v528_v2  ;;  %1326 = vmatpush3.xpose.msk.msra.mxu0 %vm538_vm0, %v709_v14 }
  0xa2   : > { %s2132_s5 = scalar_select %p513_p8, %s2330_s26, 3 }
  0xa3   : > { %s510_s3 = sand.u32 1, %s2332_s0   ;;  %s1803_s26 = smov [#allocation11]  }
  0xa4   : > { %s515_s14 = scalar_lea.vmem %s2331_s13, %s2132_s5  ;;  %1328 = vmatmul.mubr.msk.f32.vlgmr.msra.gmra.mxu0 %vm538_vm0, %v529_v3  ;;  %s518_s30 = scalar_lea.vmem %s2333_s20, %s2132_s5 }
  0xa5   : > { %v1277_v4 = vld [vmem:[%s515_s14] ss:$0 sm:$0xff]  ;;  %s1269_s28 = sshll.u32 %s510_s3, 4  ;;  %s1293_s9 = sshll.u32 %s2334_s11, 3 }
  0xa6   : > { %v1281_v32 = vld [vmem:[%s518_s30] ss:$0 sm:$0xff]  ;;  %s512_s22 = scalar_lea.vmem [#allocation11], %s1269_s28  ;;  %s1018_s27 = sadd.s32 %s1293_s9, %s1292_s15 }
  0xa7   : > { %s1294_s17 = sshll.u32 %s1018_s27, 7  ;;  %s1021_s19 = sshll.u32 %s512_s22, 4  ;;  %s2168_s19 = int_to_ptr.vmem [resolvable:$true] %s1021_s19 }
  0xa8   : > { %s2166_s4 = scalar_lea.hbm %s2335_s25, %s1294_s17  ;;  %s2170_s13 = scalar_lea.sflag [#allocation4], %s510_s3 }
  0xa9   : > { %s1642_s14 = scalar_lea.vmem %s2168_s19, 256  ;;  %s1646_s21 = sshll.u32 %s1803_s26, 4  ;;  %s1647_s21 = int_to_ptr.vmem [resolvable:$false] %s1646_s21 }
  0xaa   : > { %p1643_p10 = scmp.ne.s32.totalorder %s2168_s19, %s1642_s14  ;;  %s1648_s0 = scalar_lea.vmem %s1647_s21, 512 }
  0xab   : > { %p1649_p7 = scmp.lt.s32.totalorder %s2168_s19, %s1647_s21  ;;  %p1650_p2 = scmp.lt.s32.totalorder %s1648_s0, %s1642_s14 }
  0xac   : > { %p1644_p12 = pnand %p1643_p10, %p2336_p3 }
  0xad   : > { %p1651_p9 = por %p1650_p2, %p1649_p7 }
  0xae   : > { %p1645_p1 = pneg %p1644_p12 }
  0xb0   : > { %p1652_p11 = pnand %p1651_p9, %p1645_p1 }
 0x15f   : > { %v1324_v5 = vpop.f32.mrf.mxu1 }
 0x160   : > { %v706_v6 = vadd.f32 %v1324_v5, %v1277_v4  ;;  %v1319_v7 = vpop.f32.mrf.mxu0 }
 0x161   : > { %v700_v9 = vpop.f32.mrf.mxu1  ;;  %v620_v13 = vadd.f32 %v1319_v7, %v1273_v8 }
 0x162   : > { %v701_v10 = vadd.f32 %v1277_v4, %v700_v9  ;;  %1330 = vmatprep.subr.msk.mxu1 %vm795_vm1, %v706_v6  ;;  %v614_v11 = vpop.f32.mrf.mxu0 }
 0x163   : > { %1331 = vmatpush3.xpose.msk.msra.mxu1 %vm795_vm1, %v706_v6  ;;  %v615_v12 = vadd.f32 %v1273_v8, %v614_v11 }
 0x164   : > { %1332 = vmatprep.subr.msk.mxu1 %vm795_vm1, %v701_v10  ;;  %v1329_v31 = vpop.f32.mrf.mxu0 }
 0x165   : > { %1334 = vmatprep.mubr.msk.f32.mxu1 %vm795_vm1, %v615_v12  ;;  %v792_v33 = vadd.f32 %v1329_v31, %v1281_v32 }
 0x166   : > { %v786_v34 = vpop.f32.mrf.mxu0 }
 0x167   : > { %1333 = vmatpush3.xpose.msk.msra.mxu1 %vm795_vm1, %v701_v10  ;;  %v787_v35 = vadd.f32 %v1281_v32, %v786_v34  ;;  %1337 = vmatprep.subr.mxu0 %v792_v33 }
 0x168   : > { %1338 = vmatpush3.msra.mxu0 %v792_v33 }
 0x169   : > { %1339 = vmatprep.subr.mxu0 %v787_v35 }
 0x16a   : > { %1335 = vmatmul.mubr.msk.f32.vlgmr.msra.gmra.mxu1 %vm795_vm1, %v620_v13  ;;  %1340 = vmatpush3.msra.mxu0 %v787_v35 }
 0x22a   : > { %v1336_v15 = vpop.f32.mrf.mxu1 }
 0x22b   : > { %v884_v18 = vmul.f32 0.35355338, %v1336_v15 }
 0x22c   : > { %v874_v16 = vpop.f32.mrf.mxu1 }
 0x22d   : > { %v883_v17 = vmul.f32 0.35355338, %v874_v16  ;;  %v889_v20 = vsel %vm885_vm2, %v884_v18, -inf }
 0x22f   : > { %v886_v19 = vsel %vm885_vm2, %v883_v17, -inf }
 0x230   : > { %887 = vmax.xlane.f32.xlu0 %v886_v19 }
 0x234   : > { %890 = vmax.xlane.f32.xlu0 %v889_v20 }
 0x2b9   : > { %v888_v21 = vpop.xlane.xlu0 %887 }
 0x2ba   : > { %v892_v22 = vsub.f32 %v883_v17, %v888_v21 }
 0x2bc   : > { %v894_v23 = vmul.f32 1.442695, %v892_v22 }
 0x2bd   : > { %v891_v24 = vpop.xlane.xlu0 %890 }
 0x2be   : > { %1494 = vpow2.f32 %v894_v23  ;;  %v893_v25 = vsub.f32 %v884_v18, %v891_v24 }
 0x2c0   : > { %v896_v26 = vmul.f32 1.442695, %v893_v25 }
 0x2c2   : > { %1496 = vpow2.f32 %v896_v26 }
 0x2cb   : > { %v1495_v27 = vpop.eup %1494 }
 0x2cc   : > { %v898_v28 = vsel %vm885_vm2, %v1495_v27, 0.0 }
 0x2cd   : > { %899 = vadd.xlane.f32.xlu1 %v898_v28 }
 0x2cf   : > { %v1497_v29 = vpop.eup %1496 }
 0x2d0   : > { %v901_v30 = vsel %vm885_vm2, %v1497_v29, 0.0 }
 0x2d1   : > { %902 = vadd.xlane.f32.xlu1 %v901_v30 }
 0x356   : > { %v900_v36 = vpop.xlane.xlu1 %899 }
 0x357   : > { %1498 = vrcp.f32 %v900_v36 }
 0x35a   : > { %v903_v37 = vpop.xlane.xlu1 %902 }
 0x35b   : > { %1500 = vrcp.f32 %v903_v37 }
 0x364   : > { %v1499_v38 = vpop.eup %1498 }
 0x365   : > { %v906_v39 = vmul.f32 %v1499_v38, %v1495_v27 }
 0x367   : > { %1341 = vmatprep.mubr.msk.f32.mxu0 %vm885_vm2, %v906_v39  ;;  %908 = vst.msk [vmem:[%s512_s22] sm:$0xff] %vm885_vm2, %v906_v39 }
 0x368   : > { %v1501_v40 = vpop.eup %1500 }
 0x369   : > { %v907_v41 = vmul.f32 %v1501_v40, %v1497_v29 }
 0x36b   : > { %1342 = vmatmul.mubr.msk.f32.vlgmr.msra.gmra.mxu0 %vm885_vm2, %v907_v41  ;;  %909 = vst.msk [vmem:[%s512_s22 + $0x8] sm:$0xff] %vm885_vm2, %v907_v41 }
 0x36c   : > { %1655 = shalt.err (!%p1652_p11)
}
 0x36d   : > { %s1656_s7 = scalar_lea.hbm %s2166_s4, 256  ;;  %s1660_s30 = scalar_lea.hbm %s2335_s25, 2048 }
 0x36e   : > { %p1657_p13 = scmp.ne.s32.totalorder %s2166_s4, %s1656_s7  ;;  %p1661_p6 = scmp.lt.s32.totalorder %s2166_s4, %s2335_s25 }
 0x36f   : > { %p1662_p0 = scmp.lt.s32.totalorder %s1660_s30, %s1656_s7 }
 0x370   : > { %p1658_p5 = pnand %p1657_p13, %p2336_p3 }
 0x371   : > { %p1663_p8 = por %p1662_p0, %p1661_p6 }
 0x372   : > { %p1659_p4 = pneg %p1658_p5 }
 0x374   : > { %p1664_p10 = pnand %p1663_p8, %p1659_p4 }
 0x376   : > { %1667 = shalt.err (!%p1664_p10)
}
 0x377   : > { %s1804_s22 = smov 128   ;;  %s1805_s15 = smov 8  }
 0x378   : > { %1354 = dma.vmem_to_hbm [thread:$0]  (%p2336_p3), %s2168_s19, 256, %s2166_s4, %s2170_s13, %s1804_s22, %s1804_s22, %s1805_s15  }
 0x379   : > { %p519_p12 = scmp.lt.s32.totalorder %s2334_s11, 1  ;;  %s1270_s9 = sshll.u32 %s2132_s5, 1 }
 0x37a   : > { %s2337_s26 = sld [smem:[#allocation37_spill]] }
 0x37b   : > { %s2365_s11 = smov (!%p519_p12, %s2334_s11), 1 }
 0x37c   : > { %s1271_s27 = sshll.u32 %s2365_s11, 3 }
 0x37d   : > { %s525_s17 = sadd.s32 %s1271_s27, %s1270_s9 }
 0x37e   : > { %s1272_s1 = sshll.u32 %s525_s17, 3 }
 0x380   : > { %s527_s21 = scalar_lea.vmem %s2337_s26, %s1272_s1 }
 0x42b   : > { %v1343_v42 = vpop.f32.mrf.mxu0 }
 0x42c   : > { %992 = vst.msk [vmem:[%s527_s21 + $0x8] sm:$0xff] %vm795_vm1, %v1343_v42 }
 0x42d   : > { %v982_v43 = vpop.f32.mrf.mxu0 }
 0x42e   : > { %991 = vst.msk [vmem:[%s527_s21] sm:$0xff] %vm795_vm1, %v982_v43 }
 0x42f PF: > { %s2338_s8 = sld [smem:[#allocation16_spill]]  ;;  %p1377_p3 = scmp.ge.s32.totalorder %s1794_s18, 2 }
 0x430   : > { %p2339_p1 = scmp.ne.s32.totalorder %s2318_s24, 0 }
 0x432   : > { %p1373_p7 = pnand %p1377_p3, %p2339_p1 }
 0x434   : > { %p1374_p2 = pneg %p1373_p7 }
 0x435   : > { %s1048_s19 = sand.u32 1, %s2338_s8  }
 0x436   : > { %s1049_s5 = scalar_lea.sflag [#allocation4], %s1048_s19 }
 0x437   : > { %1737 = dma.done.wait (%p1374_p2), %s1049_s5, 256  }
 0x438   : > { %1739 = vsyncadd (%p1374_p2), %s1049_s5, 4294967040  ;;  %s31_s18 = sadd.s32 1, %s1794_s18   ;;  %s2341_s27 = sld [smem:[#allocation17_spill]] }
 0x439   : > { %p2206_p9 = scmp.ge.s32.totalorder %s31_s18, 10   ;;  %s2342_s30 = sld [smem:[#allocation18_spill]] }
 0x43a   : > { %s2343_s4 = sld [smem:[#allocation27_spill]]  ;;  %s2351_s28 = smov %s1750_s29 }
 0x43b   : > { %s2344_s13 = sld [smem:[#allocation19_spill]]  ;;  %s2352_s29 = smov %s2054_s6 }
 0x43c   : > { %s2345_s24 = sld [smem:[#allocation30_spill]]  ;;  %s2353_s9 = smov %s1762_s10 }
 0x43d   : > { %s2346_s14 = sld [smem:[#allocation22_spill]]  ;;  %s2355_s11 = smov %s1770_s12 }
 0x43e   : > { %s2347_s15 = sld [smem:[#allocation23_spill]]  ;;  %30 = sbr.rel (!%p2206_p9) target bundleno = 23 (0x17), region = 159 }
 0x43f   : > { %s2348_s16 = sld [smem:[#allocation25_spill]] }
 0x440   : > { %s2349_s17 = sld [smem:[#allocation29_spill]]  ;;  %s2354_s10 = smov %s2343_s4 }
 0x441   : > { %s2356_s12 = smov %s2344_s13 }
 0x442   : > { %s2357_s13 = smov %s2345_s24 }
 0x443   :  { %1054 = vsyncpa [#allocation3], 1 }
 0x444   :  { %1056 = vsyncpa [#allocation3 + $0x1], 1 }
 0x445   :  { %1057 = vsyncpa [#allocation6], 1 }
 0x446   :  { %1059 = vsyncpa [#allocation6 + $0x1], 1 }
 0x447   :  { %1060 = vsyncpa [#allocation9], 1 }
 0x448   :  { %1062 = vsyncpa [#allocation9 + $0x1], 1 }
 0x449   :  { %1063 = vsyncpa [#allocation4], 1 }
 0x44a   :  { %1065 = vsyncpa [#allocation4 + $0x1], 1 }

</bundles_post_ra>
